<compile_context>
chip_gen: v7x
topology: tpu7x:2x2x1
jax: 0.10.0
libtpu: 0.0.40
codegen_flags: <defaults>
</compile_context>

<pallas_src>
import jax
import jax.numpy as jnp
from jax.experimental import pallas as pl
from jax.experimental.pallas import tpu as pltpu


def _nconv_vm_kernel(a_ref, x_ref, o_ref):
    # a_ref: (W, V)   adjacency (module orientation), resident across the grid
    # x_ref: (V, TN)  lane-dense tile of the flattened (V, N*C*L) activations
    # o_ref: (W, TN)  lane-dense output tile
    o_ref[...] = jnp.dot(
        a_ref[...], x_ref[...], preferred_element_type=jnp.float32
    ).astype(o_ref.dtype)


def nconv_vm(x_vm, A, *, tn=8192, out_dtype=None,
             vmem_budget_bytes=40 * 1024 * 1024):
    """Graph diffusion step in the persistent (V, M) layout.

    x_vm: (V, M) activations, M = N*C*L   (see to_vm_layout / from_vm_layout)
    A:    (W, V) adjacency, same orientation the PyTorch module receives
    returns: (W, M)

    This is the hot-path primitive: chained diffusion steps should stay in this
    layout so the (N,C,V,L) permutes are paid at most once per gconv, not per
    step.  tn is the lane-tile along M (multiple of 128), clamped to the VMEM
    budget.  out_dtype (e.g. jnp.bfloat16) halves the output writeback bytes.
    """
    assert x_vm.ndim == 2 and A.ndim == 2
    V, M = x_vm.shape
    W, V2 = A.shape
    assert V == V2, f"A second dim {V2} must match x node dim {V}"

    if out_dtype is None:
        out_dtype = x_vm.dtype
    A = A.astype(x_vm.dtype)  # tiny; single MXU input dtype (bf16 if x is bf16)

    x_item = jnp.dtype(x_vm.dtype).itemsize
    o_item = jnp.dtype(out_dtype).itemsize
    a_item = jnp.dtype(A.dtype).itemsize

    # --- choose the lane tile ------------------------------------------------
    # Working set: double-buffered x & out tiles + (conservatively also
    # double-buffered) resident A.  Must fit the scoped-VMEM budget: v5e's
    # default scope is 16 MiB and v7x has only 64 MiB physical per TensorCore,
    # so we clamp the tile and set vmem_limit_bytes explicitly below.
    per_lane = 2 * (V * x_item + W * o_item)
    fixed = 2 * W * V * a_item
    tn_fit = (vmem_budget_bytes - fixed) // max(per_lane, 1)
    tn_max = max(128, min((tn // 128) * 128, (tn_fit // 128) * 128))

    if M <= tn_max:
        tn_eff, num_tiles = M, 1            # full-extent block (legal for any M)
    else:
        num_tiles = pl.cdiv(M, tn_max)
        if num_tiles % 2:                   # even split keeps v7x's 2 TCs balanced
            num_tiles += 1
        tn_eff = ((pl.cdiv(M, num_tiles) + 127) // 128) * 128
        num_tiles = pl.cdiv(M, tn_eff)

    used_vmem = per_lane * tn_eff + fixed
    vmem_limit = int(min(used_vmem + 8 * 1024 * 1024, 48 * 1024 * 1024))

    cost = pl.CostEstimate(
        flops=2 * W * V * M,
        transcendentals=0,
        bytes_accessed=V * M * x_item + W * V * a_item + W * M * o_item,
    )

    return pl.pallas_call(
        _nconv_vm_kernel,
        out_shape=jax.ShapeDtypeStruct((W, M), out_dtype),
        grid_spec=pltpu.PrefetchScalarGridSpec(
            num_scalar_prefetch=0,
            grid=(num_tiles,),
            in_specs=[
                pl.BlockSpec((W, V), lambda j: (0, 0)),        # A: resident
                pl.BlockSpec((V, tn_eff), lambda j: (0, j)),   # x: streamed
            ],
            out_specs=pl.BlockSpec((W, tn_eff), lambda j: (0, j)),
        ),
        compiler_params=pltpu.CompilerParams(
            dimension_semantics=("parallel",),   # v7x: 2 TCs split the tiles
            vmem_limit_bytes=vmem_limit,
        ),
        cost_estimate=cost,
    )(A, x_vm)


def to_vm_layout(x):
    """(N, C, V, L) -> (V, N*C*L).  One HBM pass; hoist out of chained steps."""
    N, C, V, L = x.shape
    return jnp.transpose(x, (2, 0, 1, 3)).reshape(V, N * C * L)


def from_vm_layout(y_vm, N, C, L):
    """(W, N*C*L) -> (N, C, W, L).  One HBM pass; hoist out of chained steps."""
    W = y_vm.shape[0]
    return y_vm.reshape(W, N, C, L).transpose(1, 2, 0, 3)


def nconv(x, A, *, tn=8192, out_dtype=None):
    """Drop-in equivalent of nconv.forward(x, A).

    x: (N, C, V, L), A: (W, V) -> (N, C, W, L).
    For repeated diffusion steps, prefer to_vm_layout + nconv_vm (chained) +
    from_vm_layout so the layout conversion is paid once, not per step.
    For bf16 compute, pass x already in bf16 (an f32->bf16 cast here would cost
    its own HBM pass).
    """
    N, C, V, L = x.shape
    y_vm = nconv_vm(to_vm_layout(x), A, tn=tn, out_dtype=out_dtype)
    return from_vm_layout(y_vm, N, C, L)


if __name__ == "__main__":
    key = jax.random.PRNGKey(0)
    k1, k2, k3, k4, k5, k6 = jax.random.split(key, 6)

    # --- test 1: small shapes, single lane tile, f32 --------------------------
    N, C, V, L, W = 2, 4, 16, 8, 16
    x = jax.random.normal(k1, (N, C, V, L), dtype=jnp.float32)
    A = jax.random.normal(k2, (W, V), dtype=jnp.float32)
    out = jax.block_until_ready(nconv(x, A))
    ref = jnp.einsum('ncvl,wv->ncwl', x, A)
    assert out.shape == (N, C, W, L)
    assert jnp.allclose(out, ref, atol=1e-4, rtol=1e-4), \
        float(jnp.max(jnp.abs(out - ref)))

    # --- test 2: multi-tile grid with a partial trailing tile, f32 ------------
    N2, C2, V2, L2, W2 = 4, 8, 24, 13, 20          # M = 416 -> 4 tiles of 128
    x2 = jax.random.normal(k3, (N2, C2, V2, L2), dtype=jnp.float32)
    A2 = jax.random.normal(k4, (W2, V2), dtype=jnp.float32)
    out2 = jax.block_until_ready(nconv(x2, A2, tn=128))
    ref2 = jnp.einsum('ncvl,wv->ncwl', x2, A2)
    assert out2.shape == (N2, C2, W2, L2)
    assert jnp.allclose(out2, ref2, atol=1e-4, rtol=1e-4), \
        float(jnp.max(jnp.abs(out2 - ref2)))

    # --- test 3: bf16 activations in, bf16 out (half the streamed bytes) ------
    x3 = x2.astype(jnp.bfloat16)
    out3 = jax.block_until_ready(nconv(x3, A2, tn=128, out_dtype=jnp.bfloat16))
    ref3 = jnp.einsum('ncvl,wv->ncwl',
                      x3.astype(jnp.float32),
                      A2.astype(jnp.bfloat16).astype(jnp.float32),
                      precision=jax.lax.Precision.HIGHEST)
    assert out3.dtype == jnp.bfloat16
    assert jnp.allclose(out3.astype(jnp.float32), ref3, atol=1e-1, rtol=5e-2), \
        float(jnp.max(jnp.abs(out3.astype(jnp.float32) - ref3)))

    # --- test 4: layout-persistent chaining (2 diffusion steps, no round trips)
    N4, C4, V4, L4 = 2, 3, 16, 8
    x4 = jax.random.normal(k5, (N4, C4, V4, L4), dtype=jnp.float32)
    A4 = jax.random.normal(k6, (V4, V4), dtype=jnp.float32) / jnp.sqrt(V4)
    xv = to_vm_layout(x4)
    y1 = nconv_vm(xv, A4)
    y2 = nconv_vm(y1, A4)                     # stays in (V, M) layout
    out4 = jax.block_until_ready(from_vm_layout(y2, N4, C4, L4))
    step1 = jnp.einsum('ncvl,wv->ncwl', x4, A4)
    ref4 = jnp.einsum('ncvl,wv->ncwl', step1, A4)
    assert out4.shape == (N4, C4, V4, L4)
    assert jnp.allclose(out4, ref4, atol=1e-3, rtol=1e-3), \
        float(jnp.max(jnp.abs(out4 - ref4)))

    print("KERNEL_OK")
</pallas_src>

<mosaic_0001>
module attributes {stable_mosaic.version = 11 : i64} {
  func.func @_nconv_vm_kernel(%arg0: i32, %arg1: memref<16x16xf32, #tpu.memory_space<vmem>>, %arg2: memref<16x64xf32, #tpu.memory_space<vmem>>, %arg3: memref<16x64xf32, #tpu.memory_space<vmem>>) attributes {dimension_semantics = [#tpu.dimension_semantics<parallel>], iteration_bounds = array<i64: 1>, scalar_prefetch = 0 : i64, scratch_operands = 0 : i64, tpu.core_type = #tpu.core_type<tc>, window_params = [{pipeline_mode = #tpu.pipeline_mode<synchronous>, transform_indices = @transform_0, window_bounds = array<i64: 16, 16>}, {transform_indices = @transform_1, window_bounds = array<i64: 16, 64>}, {transform_indices = @transform_2, window_bounds = array<i64: 16, 64>}]} {
    %c0 = arith.constant 0 : index
    %c0_0 = arith.constant 0 : index
    %0 = vector.load %arg1[%c0, %c0_0] : memref<16x16xf32, #tpu.memory_space<vmem>>, vector<16x16xf32>
    %c0_1 = arith.constant 0 : index
    %c0_2 = arith.constant 0 : index
    %1 = vector.load %arg2[%c0_1, %c0_2] : memref<16x64xf32, #tpu.memory_space<vmem>>, vector<16x64xf32>
    %cst = arith.constant dense<0.000000e+00> : vector<16x64xf32>
    %2 = tpu.matmul %0, %1, %cst {dimension_numbers = #tpu.dot_dimension_numbers<[1], [0], [0], [1], [0, 0, 1, 1], [], []>} : vector<16x16xf32>, vector<16x64xf32>, vector<16x64xf32> -> vector<16x64xf32>
    %c0_3 = arith.constant 0 : index
    %c0_4 = arith.constant 0 : index
    %3 = vector.load %arg3[%c0_3, %c0_4] : memref<16x64xf32, #tpu.memory_space<vmem>>, vector<16x64xf32>
    tpu.vector_store %arg3[%c0_3, %c0_4], %2 {strides = array<i32>} : memref<16x64xf32, #tpu.memory_space<vmem>>, vector<16x64xf32>,
    return
  }
  func.func @transform_0(%arg0: i32) -> (i32, i32) {
    %c0_i32 = arith.constant 0 : i32
    %c0_i32_0 = arith.constant 0 : i32
    %c0_i32_1 = arith.constant 0 : i32
    return %c0_i32, %c0_i32_0 : i32, i32
  }
  func.func @transform_1(%arg0: i32) -> (i32, i32) {
    %c0_i32 = arith.constant 0 : i32
    %c0_i32_0 = arith.constant 0 : i32
    return %c0_i32, %arg0 : i32, i32
  }
  func.func @transform_2(%arg0: i32) -> (i32, i32) {
    %c0_i32 = arith.constant 0 : i32
    %c0_i32_0 = arith.constant 0 : i32
    return %c0_i32, %arg0 : i32, i32
  }
}

</mosaic_0001>

<bundles_post_ra>
// kernel: tpu_custom_call.1
= control target key start
LH: loop header
LB: loop body
LE: loop exit
PB: predicated region body
PF: predicated region fallthrough
CT: control target
= control target key end

     0   :  { %7 = vsyncpa [#allocation3], 0  ;;  %s306_s0 = inlined_call_operand.hbm [shape: f32[16,16], index: 0, kind: input, shape index: {}]   ;;  %s307_s1 = inlined_call_operand.hbm [shape: f32[16,64], index: 1, kind: input, shape index: {}]   ;;  %s308_s2 = inlined_call_operand.hbm [shape: f32[16,64], index: 2, kind: output, shape index: {}]  }
   0x1   :  { %8 = vsyncpa [#allocation6], 0 }
   0x2   :  { %9 = vsyncpa [#allocation4], 0  ;;  %s241_s9 = smov [#allocation2]   ;;  %s169_s13 = scalar_lea.hbm %s306_s0, 256 }
   0x3   :  { %s15_s10 = sshll.u32 %s241_s9, 4  ;;  %p170_p0 = scmp.ne.s32.totalorder %s306_s0, %s169_s13  ;;  %s16_s10 = int_to_ptr.vmem [resolvable:$true] %s15_s10 }
   0x4   :  { %p173_p1 = scmp.lt.u32.totalorder %s169_s13, %s306_s0 }
   0x6   :  { %p175_p2 = pnand %p173_p1, %p170_p0 }
   0x8   :  { %178 = shalt.err (!%p175_p2)
}
   0x9   :  { %s179_s18 = scalar_lea.vmem %s16_s10, 256  ;;  %p184_p4 = scmp.lt.s32.totalorder %s16_s10, %s16_s10 }
   0xa   :  { %p180_p3 = scmp.ne.s32.totalorder %s16_s10, %s179_s18  ;;  %p185_p5 = scmp.lt.s32.totalorder %s179_s18, %s179_s18 }
   0xc   :  { %p186_p6 = por %p185_p5, %p184_p4 }
   0xe   :  { %p187_p7 = pnand %p186_p6, %p180_p3 }
  0x10   :  { %190 = shalt.err (!%p187_p7)
}
  0x11   :  { %s242_s19 = smov 128   ;;  %s243_s20 = smov 8  }
  0x12   :  { %21 = dma.hbm_to_vmem [thread:$0]  %s306_s0, 256, %s16_s10, [#allocation3], %s242_s19, %s242_s19, %s243_s20  }
  0x13   :  { %s244_s23 = smov [#allocation5]   ;;  %s191_s27 = scalar_lea.hbm %s307_s1, 256 }
  0x14   :  { %s27_s24 = sshll.u32 %s244_s23, 4  ;;  %p192_p8 = scmp.ne.s32.totalorder %s307_s1, %s191_s27  ;;  %s28_s24 = int_to_ptr.vmem [resolvable:$true] %s27_s24 }
  0x15   :  { %p195_p9 = scmp.lt.u32.totalorder %s191_s27, %s307_s1 }
  0x17   :  { %p197_p10 = pnand %p195_p9, %p192_p8 }
  0x19   :  { %200 = shalt.err (!%p197_p10)
}
  0x1a   :  { %s201_s4 = scalar_lea.vmem %s28_s24, 256  ;;  %p206_p12 = scmp.lt.s32.totalorder %s28_s24, %s28_s24 }
  0x1b   :  { %p202_p11 = scmp.ne.s32.totalorder %s28_s24, %s201_s4  ;;  %p207_p13 = scmp.lt.s32.totalorder %s201_s4, %s201_s4 }
  0x1d   :  { %p208_p0 = por %p207_p13, %p206_p12 }
  0x1f   :  { %p209_p1 = pnand %p208_p0, %p202_p11 }
  0x21   :  { %212 = shalt.err (!%p209_p1)
}
  0x22   :  { %33 = dma.hbm_to_vmem [thread:$0]  %s307_s1, 256, %s28_s24, [#allocation6], %s242_s19, %s242_s19, %s243_s20  }
  0x23   :  { %235 = dma.done.wait [#allocation3], 256  }
  0x24   :  { %236 = vsyncadd [#allocation3], 4294967040 }
  0x25   :  { %237 = dma.done.wait [#allocation6], 256  }
  0x26   :  { %238 = vsyncadd [#allocation6], 4294967040  ;;  %vm44_vm0 = vcmask 130048   ;;  %v42_v0 = vld [vmem:[#allocation5] sm:$0xff]  ;;  %v43_v1 = vld [vmem:[#allocation5 + $0x8] sm:$0xff]  ;;  %s245_s6 = smov [#allocation7]  }
  0x27   :  { %v40_v2 = vld [vmem:[#allocation2] sm:$0xff]  ;;  %v160_v3 = vpack.c.bf16 %v43_v1, %v42_v0  ;;  %v41_v4 = vld [vmem:[#allocation2 + $0x8] sm:$0xff]  ;;  %s134_s7 = sshll.u32 %s245_s6, 4  ;;  %vm126_vm1 = vcmask 523264   ;;  %s135_s7 = int_to_ptr.vmem [resolvable:$true] %s134_s7 }
  0x28   :  { %157 = vmatprep.mubr.msk.f32.mxu0 %vm44_vm0, %v40_v2  ;;  %s213_s1 = scalar_lea.vmem %s135_s7, 256  ;;  %p218_p3 = scmp.lt.s32.totalorder %s135_s7, %s135_s7 }
  0x29   :  { %161 = vmatprep.subr.bf16.mxu0 %v160_v3  ;;  %p214_p2 = scmp.ne.s32.totalorder %s135_s7, %s213_s1  ;;  %p219_p4 = scmp.lt.s32.totalorder %s213_s1, %s213_s1 }
  0x2a   :  { %163 = vmatpush3.bf16.msra.mxu0 %v160_v3 }
  0x2b   :  { %p220_p5 = por %p219_p4, %p218_p3 }
  0x2d   :  { %158 = vmatmul.mubr.msk.f32.vlgmr.msra.gmra.mrb[0].mxu0 %vm44_vm0, %v41_v4  ;;  %p221_p6 = pnand %p220_p5, %p214_p2 }
 0x100   :  { %v159_v5 = vpop.f32.mrb[0].mxu0 }
 0x101   :  { %128 = vst.msk [vmem:[#allocation7 + $0x8] sm:$0xff] %vm126_vm1, %v159_v5  ;;  %v117_v6 = vpop.f32.mrb[1].mxu0 }
 0x102   :  { %127 = vst.msk [vmem:[#allocation7] sm:$0xff] %vm126_vm1, %v117_v6 }
 0x103   :  { %224 = shalt.err (!%p221_p6)
}
 0x104   :  { %s225_s10 = scalar_lea.hbm %s308_s2, 256 }
 0x105   :  { %p226_p7 = scmp.ne.s32.totalorder %s308_s2, %s225_s10  ;;  %p229_p8 = scmp.lt.u32.totalorder %s225_s10, %s308_s2 }
 0x107   :  { %p231_p9 = pnand %p229_p8, %p226_p7 }
 0x109   :  { %234 = shalt.err (!%p231_p9)
}
 0x10a   :  { %140 = dma.vmem_to_hbm [thread:$0]  %s135_s7, 256, %s308_s2, [#allocation4], %s242_s19, %s242_s19, %s243_s20  }
 0x10b   :  { %239 = dma.done.wait [#allocation4], 256  }
 0x10c   :  { %240 = vsyncadd [#allocation4], 4294967040 }
 0x10d   :  { %144 = vsyncpa [#allocation3], 1 }
 0x10e   :  { %145 = vsyncpa [#allocation6], 1 }
 0x10f   :  { %146 = vsyncpa [#allocation4], 1 }

</bundles_post_ra>
